<compile_context>
chip_gen: v6e
topology: v6e:2x2x1
jax: 0.10.0
libtpu: 0.0.40
codegen_flags: <defaults>
</compile_context>

<pallas_src>
import functools

import jax
import jax.numpy as jnp
from jax.experimental import pallas as pl
from jax.experimental.pallas import tpu as pltpu


def _dropout_kernel(bits_ref, x_ref, o_ref, *, threshold: int, inv_keep: float):
    # bits_ref: (R_t, C) uint32  -- shared mask bits for this (i, row-tile)
    # x_ref/o_ref: (B1, R_t, C)  -- shared batch dim folded into the block
    keep = bits_ref[...] >= jnp.uint32(threshold)          # one integer compare
    mask = jnp.where(
        keep,
        jnp.asarray(inv_keep, dtype=o_ref.dtype),           # compile-time constants
        jnp.asarray(0.0, dtype=o_ref.dtype),
    )                                                        # (R_t, C) in x dtype
    o_ref[...] = x_ref[...] * mask                           # broadcast over B1


def _pick_row_tile(b1: int, r: int, c: int, itemsize: int) -> int:
    """Pick a row tile so one x block is ~2 MiB (keeps in+out double-buffered
    blocks + bits well under the scoped-VMEM default on v5e/v6e/v7x)."""
    budget = 2 * 1024 * 1024
    rows = budget // max(1, b1 * c * itemsize)
    if rows >= r:
        return r
    return max(8, (rows // 8) * 8)  # keep sublane-aligned


def shared_dropout(x: jax.Array, key: jax.Array, rate: float,
                   training: bool = True) -> jax.Array:
    """Dropout with the mask shared along batch_dim=1 of a 4-D input."""
    if not training or rate == 0.0:
        return x  # identity: matches nn.Dropout eval / p=0 behaviour
    assert 0.0 < rate < 1.0, "dropout rate must be in [0, 1)"

    B0, B1, R, C = x.shape
    # keep iff uniform >= rate, with uniform == bits / 2^32 (32-bit resolution)
    threshold = min(int(round(rate * float(1 << 32))), (1 << 32) - 1)
    inv_keep = 1.0 / (1.0 - rate)

    # Shared mask bits: one (R, C) slab per outer-batch element, shared over B1.
    bits = jax.random.bits(key, (B0, R, C), dtype=jnp.uint32)

    r_t = _pick_row_tile(B1, R, C, x.dtype.itemsize)
    grid = (B0, pl.cdiv(R, r_t))

    kernel = functools.partial(_dropout_kernel, threshold=threshold, inv_keep=inv_keep)

    return pl.pallas_call(
        kernel,
        out_shape=jax.ShapeDtypeStruct(x.shape, x.dtype),
        grid=grid,
        in_specs=[
            # mask bits: leading dim squeezed -> kernel sees (r_t, C)
            pl.BlockSpec((None, r_t, C), lambda i, r: (i, r, 0)),
            # x: leading dim squeezed, B1 folded into the block -> (B1, r_t, C)
            pl.BlockSpec((None, B1, r_t, C), lambda i, r: (i, 0, r, 0)),
        ],
        out_specs=pl.BlockSpec((None, B1, r_t, C), lambda i, r: (i, 0, r, 0)),
        compiler_params=pltpu.CompilerParams(
            # both axes independent -> shard across v7x's two TensorCores
            dimension_semantics=("parallel", "parallel"),
            vmem_limit_bytes=32 * 1024 * 1024,
        ),
    )(bits, x)


if __name__ == "__main__":
    key = jax.random.PRNGKey(0)
    kx, kd = jax.random.split(key)
    # Small shapes: (batch=2, N_shared=4, rows=16, cols=128), batch_dim=[1]
    x = jax.random.normal(kx, (2, 4, 16, 128), dtype=jnp.float32)
    rate = 0.25

    out = jax.block_until_ready(shared_dropout(x, kd, rate, training=True))

    # --- sanity checks -----------------------------------------------------
    # 1) zero-pattern (dropped positions) is shared along dim 1
    dropped = (out == 0.0)
    ref_pattern = dropped[:, 0:1]                     # (2, 1, 16, 128)
    assert bool(jnp.all(dropped == ref_pattern)), "mask not shared along batch_dim"

    # 2) kept positions are scaled by 1 / (1 - rate)
    kept = ~dropped
    scale = 1.0 / (1.0 - rate)
    diff = jnp.where(kept, out - x * scale, 0.0)
    assert bool(jnp.all(jnp.abs(diff) < 1e-5)), "kept values not scaled correctly"

    # 3) empirical drop fraction is near the rate (loose, deterministic seed)
    frac = float(jnp.mean(dropped[:, 0].astype(jnp.float32)))
    assert 0.15 < frac < 0.35, f"drop fraction {frac} far from rate {rate}"

    # 4) eval mode is identity
    out_eval = jax.block_until_ready(shared_dropout(x, kd, rate, training=False))
    assert bool(jnp.all(out_eval == x)), "eval mode should be identity"

    print("KERNEL_OK")
</pallas_src>

<mosaic_0001>
module attributes {stable_mosaic.version = 11 : i64} {
  func.func @_dropout_kernel(%arg0: i32, %arg1: i32, %arg2: memref<1x16x128xi32, #tpu.memory_space<vmem>>, %arg3: memref<1x4x16x128xf32, #tpu.memory_space<vmem>>, %arg4: memref<1x4x16x128xf32, #tpu.memory_space<vmem>>) attributes {dimension_semantics = [#tpu.dimension_semantics<parallel>, #tpu.dimension_semantics<parallel>], iteration_bounds = array<i64: 2, 1>, scalar_prefetch = 0 : i64, scratch_operands = 0 : i64, tpu.core_type = #tpu.core_type<tc>, window_params = [{transform_indices = @transform_0, window_bounds = array<i64: 1, 16, 128>}, {transform_indices = @transform_1, window_bounds = array<i64: 1, 4, 16, 128>}, {transform_indices = @transform_2, window_bounds = array<i64: 1, 4, 16, 128>}]} {
    %c0 = arith.constant 0 : index
    %c0_0 = arith.constant 0 : index
    %c0_1 = arith.constant 0 : index
    %0 = vector.load %arg2[%c0, %c0_0, %c0_1] : memref<1x16x128xi32, #tpu.memory_space<vmem>>, vector<1x16x128xi32>
    %1 = vector.shape_cast %0 : vector<1x16x128xi32> to vector<16x128xi32>
    %c1073741824_i32 = arith.constant 1073741824 : i32
    %2 = vector.broadcast %c1073741824_i32 : i32 to vector<16x128xi32>
    %3 = arith.cmpi uge, %1, %2 : vector<16x128xi32>
    %cst = arith.constant 1.33333337 : f32
    %cst_2 = arith.constant 0.000000e+00 : f32
    %4 = vector.broadcast %cst : f32 to vector<16x128xf32>
    %5 = vector.broadcast %cst_2 : f32 to vector<16x128xf32>
    %6 = arith.select %3, %4, %5 : vector<16x128xi1>, vector<16x128xf32>
    %c0_3 = arith.constant 0 : index
    %c0_4 = arith.constant 0 : index
    %c0_5 = arith.constant 0 : index
    %c0_6 = arith.constant 0 : index
    %7 = vector.load %arg3[%c0_3, %c0_4, %c0_5, %c0_6] : memref<1x4x16x128xf32, #tpu.memory_space<vmem>>, vector<1x4x16x128xf32>
    %8 = vector.shape_cast %7 : vector<1x4x16x128xf32> to vector<4x16x128xf32>
    %9 = vector.shape_cast %6 : vector<16x128xf32> to vector<1x16x128xf32>
    %10 = vector.broadcast %9 : vector<1x16x128xf32> to vector<4x16x128xf32>
    %11 = arith.mulf %8, %10 : vector<4x16x128xf32>
    %c0_7 = arith.constant 0 : index
    %c0_8 = arith.constant 0 : index
    %c0_9 = arith.constant 0 : index
    %c0_10 = arith.constant 0 : index
    %12 = vector.load %arg4[%c0_7, %c0_8, %c0_9, %c0_10] : memref<1x4x16x128xf32, #tpu.memory_space<vmem>>, vector<1x4x16x128xf32>
    %13 = vector.shape_cast %12 : vector<1x4x16x128xf32> to vector<4x16x128xf32>
    %14 = vector.shape_cast %11 : vector<4x16x128xf32> to vector<1x4x16x128xf32>
    tpu.vector_store %arg4[%c0_7, %c0_8, %c0_9, %c0_10], %14 {strides = array<i32>} : memref<1x4x16x128xf32, #tpu.memory_space<vmem>>, vector<1x4x16x128xf32>,
    return
  }
  func.func @transform_0(%arg0: i32, %arg1: i32) -> (i32, i32, i32) {
    %c0_i32 = arith.constant 0 : i32
    %c0_i32_0 = arith.constant 0 : i32
    return %arg0, %arg1, %c0_i32 : i32, i32, i32
  }
  func.func @transform_1(%arg0: i32, %arg1: i32) -> (i32, i32, i32, i32) {
    %c0_i32 = arith.constant 0 : i32
    %c0_i32_0 = arith.constant 0 : i32
    %c0_i32_1 = arith.constant 0 : i32
    return %arg0, %c0_i32, %arg1, %c0_i32_0 : i32, i32, i32, i32
  }
  func.func @transform_2(%arg0: i32, %arg1: i32) -> (i32, i32, i32, i32) {
    %c0_i32 = arith.constant 0 : i32
    %c0_i32_0 = arith.constant 0 : i32
    %c0_i32_1 = arith.constant 0 : i32
    return %arg0, %c0_i32, %arg1, %c0_i32_0 : i32, i32, i32, i32
  }
}

</mosaic_0001>

<bundles_post_ra>
// kernel: tpu_custom_call.1
= control target key start
LH: loop header
LB: loop body
LE: loop exit
PB: predicated region body
PF: predicated region fallthrough
CT: control target
= control target key end

     0   :  { %7 = vsyncpa [#allocation3], 0  ;;  %s832_s0 = inlined_call_operand.hbm [shape: u32[2,16,128], index: 0, kind: input, shape index: {}]   ;;  %s833_s1 = inlined_call_operand.hbm [shape: f32[2,4,16,128], index: 1, kind: input, shape index: {}]   ;;  %s834_s2 = inlined_call_operand.hbm [shape: f32[2,4,16,128], index: 2, kind: output, shape index: {}]  }
   0x1   :  { %9 = vsyncpa [#allocation3 + $0x1], 0 }
   0x2   :  { %10 = vsyncpa [#allocation6], 0 }
   0x3   :  { %12 = vsyncpa [#allocation6 + $0x1], 0 }
   0x4   :  { %13 = vsyncpa [#allocation4], 0 }
   0x5   :  { %15 = vsyncpa [#allocation4 + $0x1], 0  ;;  %s645_s9 = smov 0   ;;  %s647_s10 = smov 0  }
   0x6   :  { %s649_s11 = smov 0   ;;  %s651_s12 = smov 0  }
   0x7   :  { %s653_s13 = smov 0   ;;  %s655_s14 = smov 0  }
   0x8 LB: > { %s386_s15 = sadd.s32 4294967295, %s620_s14   ;;  %s387_s16 = sadd.s32 4294967294, %s620_s14   ;;  %s620_s14 = sphi %s655_s14, %s21_s14   ;;  %s616_s13 = sphi %s653_s13, %s845_s13   ;;  %s612_s12 = sphi %s651_s12, %s844_s12   ;;  %s608_s11 = sphi %s649_s11, %s843_s11   ;;  %s604_s10 = sphi %s647_s10, %s842_s10   ;;  %s600_s9 = sphi %s645_s9, %s841_s9  }
   0x9   : > { %s33_s17 = sadd.s32 1, %s616_s13  ;;  %s42_s18 = sadd.s32 1, %s608_s11 }
   0xa   : > { %p35_p0 = scmp.ge.s32.totalorder %s33_s17, 2  ;;  %p49_p1 = scmp.ne.s32.totalorder %s608_s11, %s604_s10 }
   0xb   : > { %p50_p2 = scmp.eq.s32.totalorder %s620_s14, 0  ;;  %p55_p3 = scmp.ne.s32.totalorder %s604_s10, %s600_s9 }
   0xc   : > { %s847_s17 = smov (%p35_p0, %s33_s17), 0  ;;  %p56_p5 = scmp.eq.s32.totalorder %s386_s15, 0 }
   0xd   : > { %p686_p4 = por %p50_p2, %p49_p1  ;;  %s37_s20 = ssub.s32 %s616_s13, %s847_s17 }
   0xe   : > { %p109_p6 = scmp.eq.s32.totalorder %s386_s15, 1  ;;  %p40_p7 = scmp.eq.s32.totalorder %s37_s20, 0 }
   0xf   : > { %p692_p8 = por %p56_p5, %p55_p3  ;;  %p115_p10 = scmp.eq.s32.totalorder %s387_s16, 1 }
  0x10   : > { %p696_p9 = por %p109_p6, %p49_p1  ;;  %p389_p12 = scmp.ge.s32.totalorder %s620_s14, 2 }
  0x11   : > { %s701_s23 = scalar_select %p40_p7, %s608_s11, %s42_s18  }
  0x12   : > { %p703_p11 = por %p115_p10, %p55_p3  ;;  %p425_p13 = scmp.lt.s32.totalorder %s620_s14, 2 }
  0x13   : > { %s710_s25 = sand.u32 1, %s608_s11   ;;  %s405_s27 = sshll.u32 %s616_s13, 8 }
  0x14   : > { %s390_s26 = sshll.u32 %s710_s25, 4  ;;  %s147_s30 = scalar_lea.hbm %s832_s0, %s405_s27 }
  0x15   : > { %s139_s3 = scalar_lea.vmem [#allocation2], %s390_s26  ;;  %p719_p0 = pnand %p425_p13, %p686_p4 }
  0x16   : > { %s148_s4 = sshll.u32 %s139_s3, 4  ;;  %p396_p1 = scmp.ge.s32.totalorder %s620_s14, 1  ;;  %s149_s4 = int_to_ptr.vmem [resolvable:$true] %s148_s4 }
  0x17   : > { %s136_s6 = scalar_lea.sflag [#allocation3], %s710_s25  ;;  %p482_p2 = pneg %p719_p0 }
  0x18   : > { %s493_s7 = scalar_lea.vmem %s149_s4, 256  ;;  %s622_s8 = smov [#allocation2]  }
  0x19   : > { %p494_p3 = scmp.ne.s32.totalorder %s149_s4, %s493_s7  ;;  %s498_s15 = sshll.u32 %s622_s8, 4  ;;  %s499_s15 = int_to_ptr.vmem [resolvable:$false] %s498_s15 }
  0x1a   : > { %s500_s16 = scalar_lea.vmem %s499_s15, 512  ;;  %p501_p4 = scmp.lt.s32.totalorder %s149_s4, %s499_s15 }
  0x1b   : > { %p496_p5 = pnand %p494_p3, %p482_p2  ;;  %p502_p7 = scmp.lt.s32.totalorder %s500_s16, %s493_s7 }
  0x1d   : > { %p497_p6 = pneg %p496_p5  ;;  %p503_p10 = por %p502_p7, %p501_p4 }
  0x1f   : > { %p504_p13 = pnand %p503_p10, %p497_p6 }
  0x21   : > { %507 = shalt.err (!%p504_p13)
}
  0x22   : > { %s623_s18 = smov 128   ;;  %s624_s19 = smov 8  }
  0x23   : > { %417 = dma.hbm_to_vmem [thread:$0]  (!%p719_p0), %s147_s30, 256, %s149_s4, %s136_s6, %s623_s18, %s623_s18, %s624_s19  }
  0x24   : > { %p179_p3 = scmp.lt.s32.totalorder %s620_s14, 3  ;;  %s393_s20 = sshll.u32 %s710_s25, 6 }
  0x25   : > { %s406_s26 = sshll.u32 %s616_s13, 10  ;;  %s162_s7 = scalar_lea.vmem [#allocation5], %s393_s20 }
  0x26   : > { %p737_p5 = pnand %p396_p1, %p179_p3  ;;  %s170_s3 = scalar_lea.hbm %s833_s1, %s406_s26 }
  0x27   : > { %s171_s8 = sshll.u32 %s162_s7, 4  ;;  %s159_s15 = scalar_lea.sflag [#allocation6], %s710_s25  ;;  %s172_s8 = int_to_ptr.vmem [resolvable:$true] %s171_s8 }
  0x28   : > { %s521_s16 = scalar_lea.vmem %s172_s8, 1024  ;;  %s625_s30 = smov [#allocation5]  }
  0x29   : > { %p522_p6 = scmp.ne.s32.totalorder %s172_s8, %s521_s16  ;;  %s526_s4 = sshll.u32 %s625_s30, 4  ;;  %s527_s4 = int_to_ptr.vmem [resolvable:$false] %s526_s4 }
  0x2a   : > { %s528_s6 = scalar_lea.vmem %s527_s4, 2048  ;;  %p529_p1 = scmp.lt.s32.totalorder %s172_s8, %s527_s4 }
  0x2b   : > { %p524_p4 = pnand %p522_p6, %p482_p2  ;;  %p530_p10 = scmp.lt.s32.totalorder %s528_s6, %s521_s16 }
  0x2d   : > { %p525_p7 = pneg %p524_p4  ;;  %p531_p13 = por %p530_p10, %p529_p1 }
  0x2f   : > { %p532_p3 = pnand %p531_p13, %p525_p7 }
  0x31   : > { %535 = shalt.err (!%p532_p3)
}
  0x32   : > { %420 = dma.hbm_to_vmem [thread:$0]  (!%p719_p0), %s170_s3, 1024, %s172_s8, %s159_s15, %s623_s18, %s623_s18, %s624_s19  }
  0x33   : > { %183 = sbr.rel (%p737_p5) target bundleno = 86 (0x56), region = 28  ;;  %s753_s25 = sand.u32 (!%p737_p5), 1, %s604_s10  }
  0x34   : > { %s397_s20 = sshll.u32 (!%p737_p5), %s753_s25, 4  ;;  %s186_s26 = scalar_lea.sflag (!%p737_p5), [#allocation3], %s753_s25 }
  0x35   : > { %s189_s28 = scalar_lea.vmem (!%p737_p5), [#allocation2], %s397_s20 }
  0x38   : > { %587 = dma.done.wait (%p692_p8), %s186_s26, 256  }
  0x39   : > { %589 = vsyncadd (%p692_p8), %s186_s26, 4294967040  ;;  %s398_s5 = sshll.u32 %s753_s25, 6  ;;  %s195_s18 = scalar_lea.sflag [#allocation6], %s753_s25 }
  0x3a   : > { %s198_s19 = scalar_lea.vmem [#allocation5], %s398_s5 }
  0x3b   : > { %591 = dma.done.wait (%p692_p8), %s195_s18, 1024  }
  0x3c   : > { %593 = vsyncadd (%p692_p8), %s195_s18, 4294966272  ;;  %v227_v0 = vld [vmem:[%s189_s28] sm:$0xff]  ;;  %s767_s27 = scalar_lea.vmem [#allocation7], %s398_s5  ;;  %v228_v2 = vld [vmem:[%s189_s28 + $0x8] sm:$0xff]  ;;  %s407_s3 = sshll.u32 %s612_s12, 10  ;;  %v626_v6 = vmov 0.0  }
  0x3d   : > { %v233_v1 = vld [vmem:[%s198_s19] sm:$0xff]  ;;  %s273_s29 = sshll.u32 %s767_s27, 4  ;;  %vm229_vm0 = vcmp.ge.u32.totalorder %v227_v0, 1073741824  ;;  %vm230_vm1 = vcmp.ge.u32.totalorder %v228_v2, 1073741824  ;;  %v234_v3 = vld [vmem:[%s198_s19 + $0x8] sm:$0xff]  ;;  %v235_v4 = vld [vmem:[%s198_s19 + $0x10] sm:$0xff]  ;;  %s776_s7 = scalar_lea.hbm %s834_s2, %s407_s3  ;;  %s771_s29 = int_to_ptr.vmem [resolvable:$true] %s273_s29 }
  0x3e   : > { %v236_v5 = vld [vmem:[%s198_s19 + $0x18] sm:$0xff]  ;;  %v231_v7 = vsel %vm229_vm0, 1.3333334, %v626_v6  ;;  %v232_v8 = vsel %vm230_vm1, 1.3333334, %v626_v6  ;;  %v237_v9 = vld [vmem:[%s198_s19 + $0x20] sm:$0xff] }
  0x3f   : > { %v238_v10 = vld [vmem:[%s198_s19 + $0x28] sm:$0xff]  ;;  %v241_v11 = vmul.f32 %v233_v1, %v231_v7  ;;  %v242_v12 = vmul.f32 %v234_v3, %v232_v8  ;;  %v243_v13 = vmul.f32 %v235_v4, %v231_v7  ;;  %v244_v14 = vmul.f32 %v236_v5, %v232_v8  ;;  %v239_v15 = vld [vmem:[%s198_s19 + $0x30] sm:$0xff]  ;;  %v240_v16 = vld [vmem:[%s198_s19 + $0x38] sm:$0xff]  ;;  %s258_s8 = scalar_lea.sflag [#allocation4], %s753_s25  ;;  %s536_s15 = scalar_lea.vmem %s771_s29, 1024 }
  0x40   : > { %v245_v17 = vmul.f32 %v237_v9, %v231_v7  ;;  %v246_v18 = vmul.f32 %v238_v10, %v232_v8  ;;  %v247_v19 = vmul.f32 %v239_v15, %v231_v7  ;;  %v248_v20 = vmul.f32 %v240_v16, %v232_v8  ;;  %p537_p8 = scmp.ne.s32.totalorder %s771_s29, %s536_s15  ;;  %s627_s16 = smov [#allocation7]  }
  0x41   : > { %249 = vst [vmem:[%s767_s27] sm:$0xff] %v241_v11  ;;  %250 = vst [vmem:[%s767_s27 + $0x8] sm:$0xff] %v242_v12  ;;  %s540_s30 = sshll.u32 %s627_s16, 4  ;;  %s541_s30 = int_to_ptr.vmem [resolvable:$false] %s540_s30 }
  0x42   : > { %251 = vst [vmem:[%s767_s27 + $0x10] sm:$0xff] %v243_v13  ;;  %252 = vst [vmem:[%s767_s27 + $0x18] sm:$0xff] %v244_v14  ;;  %p538_p0 = pnand %p537_p8, %p696_p9  ;;  %s542_s4 = scalar_lea.vmem %s541_s30, 2048 }
  0x43   : > { %253 = vst [vmem:[%s767_s27 + $0x20] sm:$0xff] %v245_v17  ;;  %254 = vst [vmem:[%s767_s27 + $0x28] sm:$0xff] %v246_v18  ;;  %p543_p5 = scmp.lt.s32.totalorder %s771_s29, %s541_s30  ;;  %p544_p6 = scmp.lt.s32.totalorder %s542_s4, %s536_s15 }
  0x44   : > { %255 = vst [vmem:[%s767_s27 + $0x30] sm:$0xff] %v247_v19  ;;  %256 = vst [vmem:[%s767_s27 + $0x38] sm:$0xff] %v248_v20  ;;  %p539_p2 = pneg %p538_p0 }
  0x45   : > { %p545_p4 = por %p544_p6, %p543_p5 }
  0x47   : > { %p546_p7 = pnand %p545_p4, %p539_p2 }
  0x49   : > { %549 = shalt.err (!%p546_p7)
}
  0x4a   : > { %s550_s6 = scalar_lea.hbm %s776_s7, 1024  ;;  %s554_s28 = scalar_lea.hbm %s834_s2, 2048 }
  0x4b   : > { %p551_p1 = scmp.ne.s32.totalorder %s776_s7, %s550_s6  ;;  %p555_p3 = scmp.lt.s32.totalorder %s776_s7, %s834_s2 }
  0x4c   : > { %p556_p8 = scmp.lt.s32.totalorder %s554_s28, %s550_s6 }
  0x4d   : > { %p552_p10 = pnand %p551_p1, %p696_p9 }
  0x4e   : > { %p557_p0 = por %p556_p8, %p555_p3 }
  0x4f   : > { %p553_p13 = pneg %p552_p10 }
  0x51   : > { %p558_p2 = pnand %p557_p0, %p553_p13 }
  0x53   : > { %561 = shalt.err (!%p558_p2)
}
  0x54   : > { %s628_s19 = smov 128   ;;  %s629_s27 = smov 8  }
  0x55   : > { %412 = dma.vmem_to_hbm [thread:$0]  (%p696_p9), %s771_s29, 1024, %s776_s7, %s258_s8, %s628_s19, %s628_s19, %s629_s27  }
  0x56 PF: > { %s288_s3 = sand.u32 1, %s600_s9   ;;  %p422_p5 = pnand %p389_p12, %p703_p11 }
  0x57   : > { %s289_s12 = scalar_lea.sflag [#allocation4], %s288_s3 }
  0x58   : > { %p423_p6 = pneg %p422_p5 }
  0x5a   : > { %595 = dma.done.wait (%p423_p6), %s289_s12, 1024  }
  0x5b   : > { %597 = vsyncadd (%p423_p6), %s289_s12, 4294966272  ;;  %s21_s14 = sadd.s32 1, %s620_s14   ;;  %s841_s9 = smov %s604_s10 }
  0x5c   : > { %p18_p4 = scmp.ge.s32.totalorder %s21_s14, 4   ;;  %s842_s10 = smov %s608_s11 }
  0x5d   : > { %s843_s11 = smov %s701_s23  ;;  %s844_s12 = smov %s616_s13 }
  0x5e   : > { %s845_s13 = smov %s847_s17  ;;  %20 = sbr.rel (!%p18_p4) target bundleno = 8 (0x8), region = 86 }
  0x63   :  { %294 = vsyncpa [#allocation3], 1 }
  0x64   :  { %296 = vsyncpa [#allocation3 + $0x1], 1 }
  0x65   :  { %297 = vsyncpa [#allocation6], 1 }
  0x66   :  { %299 = vsyncpa [#allocation6 + $0x1], 1 }
  0x67   :  { %300 = vsyncpa [#allocation4], 1 }
  0x68   :  { %302 = vsyncpa [#allocation4 + $0x1], 1 }

</bundles_post_ra>
